<compile_context>
chip_gen: v7x
topology: tpu7x:2x2x1
jax: 0.10.0
libtpu: 0.0.40
codegen_flags: <defaults>
</compile_context>

<pallas_src>
import jax
import jax.numpy as jnp
from jax.experimental import pallas as pl
from jax.experimental.pallas import tpu as pltpu

_NEG_BIG = -1e30  # logit bias for padded action lanes -> exp underflows to exactly 0


def policy_net_kernel(x_ref, w1_ref, b1_ref, w2_ref, b2_ref, o_ref):
    # fc1: (TB, S) @ (S, Hp) + (1, Hp)   (padded hidden lanes have zero W/b -> 0)
    x = x_ref[...]
    h = jnp.dot(x, w1_ref[...], preferred_element_type=jnp.float32) + b1_ref[...]
    # ReLU
    h = jnp.maximum(h, 0.0)
    # fc2: (TB, Hp) @ (Hp, Ap) + (1, Ap) (padded action lanes get -1e30 bias)
    logits = jnp.dot(h, w2_ref[...], preferred_element_type=jnp.float32) + b2_ref[...]
    # softmax over the last axis (== dim=1 of the 2-D logits). Padded lanes contribute
    # exp(-1e30 - m) == 0, so real-action probabilities are unchanged.
    m = jnp.max(logits, axis=-1, keepdims=True)
    e = jnp.exp(logits - m)
    denom = jnp.sum(e, axis=-1, keepdims=True)
    # Exact divide: rows sum to exactly 1 (required downstream for categorical
    # sampling / log-probs); the extra VPU work is free at these sizes.
    o_ref[...] = (e / denom).astype(o_ref.dtype)


def _round_up(v, m):
    return ((v + m - 1) // m) * m


def _choose_tiling(batch, tb_target=512):
    """Pick (TB, B_pad, n_tiles): one tile for small batches, an even number of
    ~tb_target-row tiles for large batches (keeps both v7x TensorCores busy)."""
    b8 = _round_up(batch, 8)
    if b8 <= 2 * tb_target:
        return b8, b8, 1
    n_tiles = _round_up(pl.cdiv(b8, tb_target), 2)   # even grid for v7x megacore
    tb = _round_up(pl.cdiv(b8, n_tiles), 8)
    return tb, n_tiles * tb, n_tiles


def prepare_policy_net_params(w1, b1, w2, b2):
    """One-time layout plumbing (call ONCE, outside the per-step forward):
      - zero-pad hidden lanes to a multiple of 128 (ReLU(0)=0, zero w2 rows -> no effect),
      - pad action lanes to 128 with a -1e30 logit bias (zero softmax mass).
    Returns the padded param tuple to pass to policy_net_forward."""
    S, H = w1.shape
    A = w2.shape[1]
    h_pad = _round_up(max(H, 128), 128)
    a_pad = _round_up(max(A, 128), 128)
    w1p = jnp.zeros((S, h_pad), jnp.float32).at[:, :H].set(w1)
    b1p = jnp.zeros((1, h_pad), jnp.float32).at[:, :H].set(jnp.reshape(b1, (1, H)))
    w2p = jnp.zeros((h_pad, a_pad), jnp.float32).at[:H, :A].set(w2)
    b2p = jnp.full((1, a_pad), _NEG_BIG, jnp.float32).at[:, :A].set(jnp.reshape(b2, (1, A)))
    return w1p, b1p, w2p, b2p


def policy_net_forward(x, padded_params, n_actions, *, tb_target=512):
    """x: (B, n_states); padded_params from prepare_policy_net_params -> (B, n_actions)."""
    w1p, b1p, w2p, b2p = padded_params
    B, S = x.shape
    assert S == w1p.shape[0]
    h_pad = w1p.shape[1]
    a_pad = w2p.shape[1]

    TB, B_pad, n_tiles = _choose_tiling(B, tb_target)
    # Only pay the x re-copy when batch padding is actually needed.
    xp = x if B_pad == B else jnp.zeros((B_pad, S), x.dtype).at[:B].set(x)

    flops = 2 * B_pad * (S * h_pad + h_pad * a_pad)
    bytes_accessed = 4 * (xp.size + w1p.size + b1p.size + w2p.size + b2p.size
                          + B_pad * a_pad)

    out = pl.pallas_call(
        policy_net_kernel,
        out_shape=jax.ShapeDtypeStruct((B_pad, a_pad), jnp.float32),
        grid_spec=pltpu.PrefetchScalarGridSpec(
            num_scalar_prefetch=0,
            grid=(n_tiles,),
            in_specs=[
                # x tiled over batch; weights/biases resident (constant index_map).
                pl.BlockSpec((TB, S), lambda i: (i, 0)),
                pl.BlockSpec((S, h_pad), lambda i: (0, 0)),
                pl.BlockSpec((1, h_pad), lambda i: (0, 0)),
                pl.BlockSpec((h_pad, a_pad), lambda i: (0, 0)),
                pl.BlockSpec((1, a_pad), lambda i: (0, 0)),
            ],
            out_specs=pl.BlockSpec((TB, a_pad), lambda i: (i, 0)),
        ),
        compiler_params=pltpu.CompilerParams(
            dimension_semantics=("parallel",),  # shard batch grid across TCs (v7x)
        ),
        cost_estimate=pl.CostEstimate(
            flops=flops,
            transcendentals=B_pad * a_pad,   # exp per (padded) logit
            bytes_accessed=bytes_accessed,
        ),
    )(xp, w1p, b1p, w2p, b2p)

    # Slice back to the real batch / action dims; padded lanes carry zero mass,
    # so each real row sums to exactly 1.
    return out[:B, :n_actions]


def init_policy_net_params(key, n_states, n_hiddens, n_actions):
    """Deterministic init mirroring PyTorch nn.Linear default (uniform +/- 1/sqrt(fan_in))."""
    k1, k2, k3, k4 = jax.random.split(key, 4)
    bound1 = 1.0 / jnp.sqrt(jnp.float32(n_states))
    bound2 = 1.0 / jnp.sqrt(jnp.float32(n_hiddens))
    # Stored as (in, out), i.e. the transpose of PyTorch's (out, in) weight.
    w1 = jax.random.uniform(k1, (n_states, n_hiddens), jnp.float32, -bound1, bound1)
    b1 = jax.random.uniform(k2, (1, n_hiddens), jnp.float32, -bound1, bound1)
    w2 = jax.random.uniform(k3, (n_hiddens, n_actions), jnp.float32, -bound2, bound2)
    b2 = jax.random.uniform(k4, (1, n_actions), jnp.float32, -bound2, bound2)
    return w1, b1, w2, b2


if __name__ == "__main__":
    n_states, n_hiddens, n_actions = 16, 32, 8

    key = jax.random.PRNGKey(0)
    kx, kx2, kp = jax.random.split(key, 3)
    w1, b1, w2, b2 = init_policy_net_params(kp, n_states, n_hiddens, n_actions)

    # Pad the parameters ONCE (outside the per-step forward).
    padded_params = prepare_policy_net_params(w1, b1, w2, b2)

    def ref_forward(x):
        h = jnp.maximum(x @ w1 + b1, 0.0)
        return jax.nn.softmax(h @ w2 + b2, axis=1)

    # Case 1: small per-step batch (not a multiple of 8) -> single tile, grid=(1,).
    x_small = jax.random.normal(kx, (100, n_states), jnp.float32)
    out_small = jax.block_until_ready(
        policy_net_forward(x_small, padded_params, n_actions))
    assert out_small.shape == (100, n_actions)
    assert jnp.allclose(out_small, ref_forward(x_small), atol=1e-5, rtol=1e-5)
    assert jnp.allclose(jnp.sum(out_small, axis=1), 1.0, atol=1e-5)

    # Case 2: larger batch -> even multi-tile grid (both v7x TensorCores used).
    x_big = jax.random.normal(kx2, (1040, n_states), jnp.float32)
    out_big = jax.block_until_ready(
        policy_net_forward(x_big, padded_params, n_actions, tb_target=512))
    assert out_big.shape == (1040, n_actions)
    assert jnp.allclose(out_big, ref_forward(x_big), atol=1e-5, rtol=1e-5)
    assert jnp.allclose(jnp.sum(out_big, axis=1), 1.0, atol=1e-5)

    print("KERNEL_OK")
</pallas_src>

<mosaic_0001>
module attributes {stable_mosaic.version = 11 : i64} {
  func.func @policy_net_kernel(%arg0: i32, %arg1: memref<104x16xf32, #tpu.memory_space<vmem>>, %arg2: memref<16x128xf32, #tpu.memory_space<vmem>>, %arg3: memref<1x128xf32, #tpu.memory_space<vmem>>, %arg4: memref<128x128xf32, #tpu.memory_space<vmem>>, %arg5: memref<1x128xf32, #tpu.memory_space<vmem>>, %arg6: memref<104x128xf32, #tpu.memory_space<vmem>>) attributes {dimension_semantics = [#tpu.dimension_semantics<parallel>], iteration_bounds = array<i64: 1>, scalar_prefetch = 0 : i64, scratch_operands = 0 : i64, tpu.core_type = #tpu.core_type<tc>, window_params = [{transform_indices = @transform_0, window_bounds = array<i64: 104, 16>}, {pipeline_mode = #tpu.pipeline_mode<synchronous>, transform_indices = @transform_1, window_bounds = array<i64: 16, 128>}, {pipeline_mode = #tpu.pipeline_mode<synchronous>, transform_indices = @transform_2, window_bounds = array<i64: 1, 128>}, {pipeline_mode = #tpu.pipeline_mode<synchronous>, transform_indices = @transform_3, window_bounds = array<i64: 128, 128>}, {pipeline_mode = #tpu.pipeline_mode<synchronous>, transform_indices = @transform_4, window_bounds = array<i64: 1, 128>}, {transform_indices = @transform_5, window_bounds = array<i64: 104, 128>}]} {
    %c0 = arith.constant 0 : index
    %c0_0 = arith.constant 0 : index
    %0 = vector.load %arg1[%c0, %c0_0] : memref<104x16xf32, #tpu.memory_space<vmem>>, vector<104x16xf32>
    %c0_1 = arith.constant 0 : index
    %c0_2 = arith.constant 0 : index
    %1 = vector.load %arg2[%c0_1, %c0_2] : memref<16x128xf32, #tpu.memory_space<vmem>>, vector<16x128xf32>
    %cst = arith.constant dense<0.000000e+00> : vector<104x128xf32>
    %2 = tpu.matmul %0, %1, %cst {dimension_numbers = #tpu.dot_dimension_numbers<[1], [0], [0], [1], [0, 0, 1, 1], [], []>} : vector<104x16xf32>, vector<16x128xf32>, vector<104x128xf32> -> vector<104x128xf32>
    %c0_3 = arith.constant 0 : index
    %c0_4 = arith.constant 0 : index
    %3 = vector.load %arg3[%c0_3, %c0_4] : memref<1x128xf32, #tpu.memory_space<vmem>>, vector<1x128xf32>
    %4 = vector.broadcast %3 : vector<1x128xf32> to vector<104x128xf32>
    %5 = arith.addf %2, %4 : vector<104x128xf32>
    %cst_5 = arith.constant 0.000000e+00 : f32
    %6 = vector.broadcast %cst_5 : f32 to vector<104x128xf32>
    %7 = arith.maximumf %5, %6 : vector<104x128xf32>
    %c0_6 = arith.constant 0 : index
    %c0_7 = arith.constant 0 : index
    %8 = vector.load %arg4[%c0_6, %c0_7] : memref<128x128xf32, #tpu.memory_space<vmem>>, vector<128x128xf32>
    %cst_8 = arith.constant dense<0.000000e+00> : vector<104x128xf32>
    %9 = tpu.matmul %7, %8, %cst_8 {dimension_numbers = #tpu.dot_dimension_numbers<[1], [0], [0], [1], [0, 0, 1, 1], [], []>} : vector<104x128xf32>, vector<128x128xf32>, vector<104x128xf32> -> vector<104x128xf32>
    %c0_9 = arith.constant 0 : index
    %c0_10 = arith.constant 0 : index
    %10 = vector.load %arg5[%c0_9, %c0_10] : memref<1x128xf32, #tpu.memory_space<vmem>>, vector<1x128xf32>
    %11 = vector.broadcast %10 : vector<1x128xf32> to vector<104x128xf32>
    %12 = arith.addf %9, %11 : vector<104x128xf32>
    %cst_11 = arith.constant dense<0xFF800000> : vector<104xf32>
    %13 = vector.multi_reduction <maximumf>, %12, %cst_11 [1] : vector<104x128xf32> to vector<104xf32>
    %14 = vector.shape_cast %13 : vector<104xf32> to vector<104x1xf32>
    %15 = vector.broadcast %14 : vector<104x1xf32> to vector<104x128xf32>
    %16 = arith.subf %12, %15 : vector<104x128xf32>
    %17 = math.exp %16 : vector<104x128xf32>
    %cst_12 = arith.constant dense<0.000000e+00> : vector<104xf32>
    %18 = vector.multi_reduction <add>, %17, %cst_12 [1] : vector<104x128xf32> to vector<104xf32>
    %19 = vector.shape_cast %18 : vector<104xf32> to vector<104x1xf32>
    %20 = vector.broadcast %19 : vector<104x1xf32> to vector<104x128xf32>
    %21 = arith.divf %17, %20 : vector<104x128xf32>
    %c0_13 = arith.constant 0 : index
    %c0_14 = arith.constant 0 : index
    %22 = vector.load %arg6[%c0_13, %c0_14] : memref<104x128xf32, #tpu.memory_space<vmem>>, vector<104x128xf32>
    tpu.vector_store %arg6[%c0_13, %c0_14], %21 {strides = array<i32>} : memref<104x128xf32, #tpu.memory_space<vmem>>, vector<104x128xf32>,
    return
  }
  func.func @transform_0(%arg0: i32) -> (i32, i32) {
    %c0_i32 = arith.constant 0 : i32
    %c0_i32_0 = arith.constant 0 : i32
    return %arg0, %c0_i32 : i32, i32
  }
  func.func @transform_1(%arg0: i32) -> (i32, i32) {
    %c0_i32 = arith.constant 0 : i32
    %c0_i32_0 = arith.constant 0 : i32
    %c0_i32_1 = arith.constant 0 : i32
    return %c0_i32, %c0_i32_0 : i32, i32
  }
  func.func @transform_2(%arg0: i32) -> (i32, i32) {
    %c0_i32 = arith.constant 0 : i32
    %c0_i32_0 = arith.constant 0 : i32
    %c0_i32_1 = arith.constant 0 : i32
    return %c0_i32, %c0_i32_0 : i32, i32
  }
  func.func @transform_3(%arg0: i32) -> (i32, i32) {
    %c0_i32 = arith.constant 0 : i32
    %c0_i32_0 = arith.constant 0 : i32
    %c0_i32_1 = arith.constant 0 : i32
    return %c0_i32, %c0_i32_0 : i32, i32
  }
  func.func @transform_4(%arg0: i32) -> (i32, i32) {
    %c0_i32 = arith.constant 0 : i32
    %c0_i32_0 = arith.constant 0 : i32
    %c0_i32_1 = arith.constant 0 : i32
    return %c0_i32, %c0_i32_0 : i32, i32
  }
  func.func @transform_5(%arg0: i32) -> (i32, i32) {
    %c0_i32 = arith.constant 0 : i32
    %c0_i32_0 = arith.constant 0 : i32
    return %arg0, %c0_i32 : i32, i32
  }
}

</mosaic_0001>

<bundles_post_ra>
// kernel: tpu_custom_call.1
= control target key start
LH: loop header
LB: loop body
LE: loop exit
PB: predicated region body
PF: predicated region fallthrough
CT: control target
= control target key end

     0   :  { %10 = vsyncpa [#allocation3], 0  ;;  %s1188_s0 = inlined_call_operand.vmem [shape: f32[104,16], index: 0, kind: input, shape index: {}]   ;;  %s1189_s1 = inlined_call_operand.hbm [shape: f32[16,128], index: 1, kind: input, shape index: {}]   ;;  %s1190_s2 = inlined_call_operand.vmem [shape: f32[1,128], index: 2, kind: input, shape index: {}]   ;;  %s1191_s3 = inlined_call_operand.vmem [shape: f32[128,128], index: 3, kind: input, shape index: {}]   ;;  %s1192_s4 = inlined_call_operand.vmem [shape: f32[1,128], index: 4, kind: input, shape index: {}]   ;;  %s1193_s5 = inlined_call_operand.hbm [shape: f32[104,128], index: 5, kind: output, shape index: {}]  }
   0x1   :  { %11 = vsyncpa [#allocation4], 0  ;;  %s863_s18 = smov [#allocation2]   ;;  %s815_s22 = scalar_lea.hbm %s1189_s1, 256 }
   0x2   :  { %s19_s19 = sshll.u32 %s863_s18, 4  ;;  %p816_p0 = scmp.ne.s32.totalorder %s1189_s1, %s815_s22  ;;  %s20_s19 = int_to_ptr.vmem [resolvable:$true] %s19_s19 }
   0x3   :  { %p819_p1 = scmp.lt.u32.totalorder %s815_s22, %s1189_s1 }
   0x5   :  { %p821_p2 = pnand %p819_p1, %p816_p0 }
   0x7   :  { %824 = shalt.err (!%p821_p2)
}
   0x8   :  { %s825_s27 = scalar_lea.vmem %s20_s19, 256  ;;  %p830_p4 = scmp.lt.s32.totalorder %s20_s19, %s20_s19 }
   0x9   :  { %p826_p3 = scmp.ne.s32.totalorder %s20_s19, %s825_s27  ;;  %p831_p5 = scmp.lt.s32.totalorder %s825_s27, %s825_s27 }
   0xb   :  { %p832_p6 = por %p831_p5, %p830_p4 }
   0xd   :  { %p833_p7 = pnand %p832_p6, %p826_p3 }
   0xf   :  { %836 = shalt.err (!%p833_p7)
}
  0x10   :  { %s864_s28 = smov 128   ;;  %s865_s29 = smov 8  }
  0x11   :  { %25 = dma.hbm_to_vmem [thread:$0]  %s1189_s1, 256, %s20_s19, [#allocation3], %s864_s28, %s864_s28, %s865_s29  }
  0x12   :  { %859 = dma.done.wait [#allocation3], 256  }
  0x13   :  { %860 = vsyncadd [#allocation3], 4294967040  ;;  %v866_v0 = vmov 0.0|0.0   ;;  %vm867_vm0 = vmmov 0   ;;  %v868_v1 = vmov 0.0   ;;  %v48_v2 = vld [vmem:[#allocation2] sm:$0xff] }
  0x14   :  { %713 = vmatprep.subr.bf16.mxu0 %v866_v0  ;;  %603 = vmatprep.mubr.msk.f32.mxu0 %vm867_vm0, %v868_v1  ;;  %v49_v3 = vld [vmem:[#allocation2 + $0x8] sm:$0xff]  ;;  %v35_v5 = vld [vmem:[%s1188_s0] sm:$0xff]  ;;  %vm57_vm1 = vcmask 130048   ;;  %v242_v8 = vld [vmem:[%s1191_s3 + $0x10] sm:$0xff] }
  0x15   :  { %740 = vmatprep.subr.bf16.mxu1 %v866_v0  ;;  %683 = vmatprep.mubr.msk.f32.mxu1 %vm867_vm0, %v868_v1  ;;  %v714_v4 = vpack.c.bf16 %v49_v3, %v48_v2  ;;  %v240_v6 = vld [vmem:[%s1191_s3] sm:$0xff]  ;;  %v241_v7 = vld [vmem:[%s1191_s3 + $0x8] sm:$0xff]  ;;  %v243_v10 = vld [vmem:[%s1191_s3 + $0x18] sm:$0xff] }
  0x16   :  { %v717_v9 = vpack.c.bf16 %v241_v7, %v240_v6  ;;  %v36_v11 = vld [vmem:[%s1188_s0 + $0x8] sm:$0xff]  ;;  %v720_v12 = vpack.c.bf16 %v243_v10, %v242_v8  ;;  %v244_v13 = vld [vmem:[%s1191_s3 + $0x20] sm:$0xff]  ;;  %v37_v15 = vld [vmem:[%s1188_s0 + $0x10] sm:$0xff] }
  0x17   :  { %715 = vmatpush3.bf16.msra.mxu0 %v714_v4  ;;  %v245_v14 = vld [vmem:[%s1191_s3 + $0x28] sm:$0xff]  ;;  %v246_v17 = vld [vmem:[%s1191_s3 + $0x30] sm:$0xff]  ;;  %v247_v18 = vld [vmem:[%s1191_s3 + $0x38] sm:$0xff] }
  0x18   :  { %716 = vmatprep.subr.bf16.mxu0 %v866_v0  ;;  %748 = vmatpush3.bf16.msra.mxu1 %v717_v9  ;;  %v723_v16 = vpack.c.bf16 %v245_v14, %v244_v13  ;;  %v38_v19 = vld [vmem:[%s1188_s0 + $0x18] sm:$0xff]  ;;  %v726_v20 = vpack.c.bf16 %v247_v18, %v246_v17  ;;  %v248_v21 = vld [vmem:[%s1191_s3 + $0x40] sm:$0xff]  ;;  %v249_v22 = vld [vmem:[%s1191_s3 + $0x48] sm:$0xff] }
  0x19   :  { %741 = vmatprep.subr.bf16.mxu1 %v866_v0  ;;  %v39_v23 = vld [vmem:[%s1188_s0 + $0x20] sm:$0xff]  ;;  %v729_v24 = vpack.c.bf16 %v249_v22, %v248_v21  ;;  %v250_v25 = vld [vmem:[%s1191_s3 + $0x50] sm:$0xff]  ;;  %v251_v26 = vld [vmem:[%s1191_s3 + $0x58] sm:$0xff] }
  0x1a   :  { %604 = vmatmul.mubr.msk.f32.vlgmr.msra.gmra.mrb[0].mxu0 %vm57_vm1, %v35_v5  ;;  %v40_v27 = vld [vmem:[%s1188_s0 + $0x28] sm:$0xff]  ;;  %v732_v28 = vpack.c.bf16 %v251_v26, %v250_v25  ;;  %v252_v29 = vld [vmem:[%s1191_s3 + $0x60] sm:$0xff]  ;;  %v41_v31 = vld [vmem:[%s1188_s0 + $0x30] sm:$0xff] }
  0x1b   :  { %606 = vmatprep.mubr.msk.f32.mxu0 %vm867_vm0, %v868_v1  ;;  %718 = vmatpush3.bf16.msra.mxu0 %v717_v9  ;;  %v253_v30 = vld [vmem:[%s1191_s3 + $0x68] sm:$0xff]  ;;  %v42_v33 = vld [vmem:[%s1188_s0 + $0x38] sm:$0xff]  ;;  %v43_v34 = vld [vmem:[%s1188_s0 + $0x40] sm:$0xff] }
  0x1c   :  { %719 = vmatprep.subr.bf16.mxu0 %v866_v0  ;;  %749 = vmatpush3.bf16.msra.mxu1 %v720_v12  ;;  %v735_v32 = vpack.c.bf16 %v253_v30, %v252_v29  ;;  %v44_v35 = vld [vmem:[%s1188_s0 + $0x48] sm:$0xff]  ;;  %v45_v36 = vld [vmem:[%s1188_s0 + $0x50] sm:$0xff]  ;;  %v46_v37 = vld [vmem:[%s1188_s0 + $0x58] sm:$0xff] }
  0x1d   :  { %742 = vmatprep.subr.bf16.mxu1 %v866_v0  ;;  %v47_v38 = vld [vmem:[%s1188_s0 + $0x60] sm:$0xff]  ;;  %v254_v39 = vld [vmem:[%s1191_s3 + $0x70] sm:$0xff]  ;;  %v255_v40 = vld [vmem:[%s1191_s3 + $0x78] sm:$0xff]  ;;  %s869_s3 = smov [#allocation5]  }
  0x1e   :  { %607 = vmatmul.mubr.msk.f32.gmra.mrb[2].mxu0 %vm57_vm1, %v36_v11  ;;  %v738_v41 = vpack.c.bf16 %v255_v40, %v254_v39  ;;  %v1065_v42 = vld [vmem:[%s1190_s2] ss:$0 sm:$0xff] }
  0x1f   :  { %609 = vmatprep.mubr.msk.f32.mxu0 %vm867_vm0, %v868_v1  ;;  %721 = vmatpush3.bf16.msra.mxu0 %v720_v12 }
  0x20   :  { %722 = vmatprep.subr.bf16.mxu0 %v866_v0  ;;  %750 = vmatpush3.bf16.msra.mxu1 %v723_v16 }
  0x21   :  { %743 = vmatprep.subr.bf16.mxu1 %v866_v0 }
  0x22   :  { %610 = vmatmul.mubr.msk.f32.gmra.mrb[4].mxu0 %vm57_vm1, %v37_v15 }
  0x23   :  { %612 = vmatprep.mubr.msk.f32.mxu0 %vm867_vm0, %v868_v1  ;;  %724 = vmatpush3.bf16.msra.mxu0 %v723_v16 }
  0x24   :  { %725 = vmatprep.subr.bf16.mxu0 %v866_v0  ;;  %751 = vmatpush3.bf16.msra.mxu1 %v726_v20 }
  0x25   :  { %744 = vmatprep.subr.bf16.mxu1 %v866_v0 }
  0x26   :  { %613 = vmatmul.mubr.msk.f32.gmra.mrb[6].mxu0 %vm57_vm1, %v38_v19 }
  0x27   :  { %615 = vmatprep.mubr.msk.f32.mxu0 %vm867_vm0, %v868_v1  ;;  %727 = vmatpush3.bf16.msra.mxu0 %v726_v20 }
  0x28   :  { %728 = vmatprep.subr.bf16.mxu0 %v866_v0  ;;  %752 = vmatpush3.bf16.msra.mxu1 %v729_v24 }
  0x29   :  { %745 = vmatprep.subr.bf16.mxu1 %v866_v0 }
  0x2a   :  { %616 = vmatmul.mubr.msk.f32.gmra.mrb[8].mxu0 %vm57_vm1, %v39_v23 }
  0x2b   :  { %618 = vmatprep.mubr.msk.f32.mxu0 %vm867_vm0, %v868_v1  ;;  %730 = vmatpush3.bf16.msra.mxu0 %v729_v24 }
  0x2c   :  { %731 = vmatprep.subr.bf16.mxu0 %v866_v0  ;;  %753 = vmatpush3.bf16.msra.mxu1 %v732_v28 }
  0x2d   :  { %746 = vmatprep.subr.bf16.mxu1 %v866_v0 }
  0x2e   :  { %619 = vmatmul.mubr.msk.f32.gmra.mrb[10].mxu0 %vm57_vm1, %v40_v27 }
  0x2f   :  { %621 = vmatprep.mubr.msk.f32.mxu0 %vm867_vm0, %v868_v1  ;;  %733 = vmatpush3.bf16.msra.mxu0 %v732_v28 }
  0x30   :  { %734 = vmatprep.subr.bf16.mxu0 %v866_v0  ;;  %754 = vmatpush3.bf16.msra.mxu1 %v735_v32 }
  0x31   :  { %747 = vmatprep.subr.bf16.mxu1 %v866_v0 }
  0x32   :  { %622 = vmatmul.mubr.msk.f32.gmra.mrb[12].mxu0 %vm57_vm1, %v41_v31 }
  0x33   :  { %624 = vmatprep.mubr.msk.f32.mxu0 %vm867_vm0, %v868_v1  ;;  %736 = vmatpush3.bf16.msra.mxu0 %v735_v32  ;;  %v554_v32 = vld [vmem:[%s1192_s4] ss:$0 sm:$0xff]  ;;  %s528_s4 = sshll.u32 %s869_s3, 4  ;;  %s529_s4 = int_to_ptr.vmem [resolvable:$true] %s528_s4 }
  0x34   :  { %737 = vmatprep.subr.bf16.mxu0 %v866_v0  ;;  %755 = vmatpush3.bf16.msra.mxu1 %v738_v41  ;;  %s837_s18 = scalar_lea.vmem %s529_s4, 1664  ;;  %p842_p9 = scmp.lt.s32.totalorder %s529_s4, %s529_s4 }
  0x35   :  { %p838_p8 = scmp.ne.s32.totalorder %s529_s4, %s837_s18  ;;  %p843_p10 = scmp.lt.s32.totalorder %s837_s18, %s837_s18 }
  0x36   :  { %625 = vmatmul.mubr.msk.f32.gmra.mrb[14].mxu0 %vm57_vm1, %v42_v33 }
  0x37   :  { %627 = vmatprep.mubr.msk.f32.mxu0 %vm867_vm0, %v868_v1  ;;  %739 = vmatpush3.bf16.msra.mxu0 %v738_v41  ;;  %p844_p11 = por %p843_p10, %p842_p9 }
  0x39   :  { %p845_p12 = pnand %p844_p11, %p838_p8 }
  0x3a   :  { %628 = vmatmul.mubr.msk.f32.gmra.mrb[16].mxu0 %vm57_vm1, %v43_v34 }
  0x3b   :  { %630 = vmatprep.mubr.msk.f32.mxu0 %vm867_vm0, %v868_v1 }
  0x3e   :  { %631 = vmatmul.mubr.msk.f32.gmra.mrb[18].mxu0 %vm57_vm1, %v44_v35 }
  0x3f   :  { %633 = vmatprep.mubr.msk.f32.mxu0 %vm867_vm0, %v868_v1 }
  0x42   :  { %634 = vmatmul.mubr.msk.f32.gmra.mrb[20].mxu0 %vm57_vm1, %v45_v36 }
  0x43   :  { %636 = vmatprep.mubr.msk.f32.mxu0 %vm867_vm0, %v868_v1 }
  0x46   :  { %637 = vmatmul.mubr.msk.f32.gmra.mrb[22].mxu0 %vm57_vm1, %v46_v37 }
  0x47   :  { %639 = vmatprep.mubr.msk.f32.mxu0 %vm867_vm0, %v868_v1 }
  0x4a   :  { %640 = vmatmul.mubr.msk.f32.gmra.mrb[24].mxu0 %vm57_vm1, %v47_v38 }
  0x4b   :  { %674 = vmatprep.mubr.msk.f32.mxu0 %vm867_vm0, %v868_v1 }
  0xed   :  { %v163_v43 = vpop.f32.mrb[0].mxu0 }
  0xee   :  { %v164_v44 = vadd.f32 %v1065_v42, %v163_v43  ;;  %v605_v45 = vpop.f32.mrb[1].mxu0 }
  0xf0   :  { %v227_v46 = vmax.f32 %v164_v44, 0.0 }
  0xf1   :  { %v168_v47 = vpop.f32.mrb[2].mxu0 }
  0xf2   :  { %v169_v48 = vadd.f32 %v1065_v42, %v168_v47  ;;  %v608_v49 = vpop.f32.mrb[3].mxu0  ;;  %675 = vmatmul.mubr.f32.vlgmr.msra.gmra.mrb[26].mxu0 %v227_v46 }
  0xf3   :  { %677 = vmatprep.mubr.msk.f32.mxu0 %vm867_vm0, %v868_v1 }
  0xf4   :  { %v228_v50 = vmax.f32 %v169_v48, 0.0 }
  0xf5   :  { %v173_v51 = vpop.f32.mrb[4].mxu0 }
  0xf6   :  { %v174_v52 = vadd.f32 %v1065_v42, %v173_v51  ;;  %v611_v53 = vpop.f32.mrb[5].mxu0  ;;  %678 = vmatmul.mubr.f32.gmra.mrb[28].mxu0 %v228_v50 }
  0xf7   :  { %680 = vmatprep.mubr.msk.f32.mxu0 %vm867_vm0, %v868_v1 }
  0xf8   :  { %v229_v54 = vmax.f32 %v174_v52, 0.0 }
  0xf9   :  { %v178_v55 = vpop.f32.mrb[6].mxu0 }
  0xfa   :  { %v179_v56 = vadd.f32 %v1065_v42, %v178_v55  ;;  %v614_v57 = vpop.f32.mrb[7].mxu0  ;;  %681 = vmatmul.mubr.f32.gmra.mrb[30].mxu0 %v229_v54 }
  0xfc   :  { %v230_v58 = vmax.f32 %v179_v56, 0.0 }
  0xfd   :  { %v183_v59 = vpop.f32.mrb[8].mxu0 }
  0xfe   :  { %v184_v60 = vadd.f32 %v1065_v42, %v183_v59  ;;  %v617_v61 = vpop.f32.mrb[9].mxu0  ;;  %684 = vmatmul.mubr.f32.vlgmr.msra.gmra.mrb[0].mxu1 %v230_v58 }
  0xff   :  { %686 = vmatprep.mubr.msk.f32.mxu1 %vm867_vm0, %v868_v1 }
 0x100   :  { %v231_v62 = vmax.f32 %v184_v60, 0.0 }
 0x101   :  { %v188_v63 = vpop.f32.mrb[10].mxu0 }
 0x102   :  { %v189_v0 = vadd.f32 %v1065_v42, %v188_v63  ;;  %v620_v2 = vpop.f32.mrb[11].mxu0  ;;  %687 = vmatmul.mubr.f32.gmra.mrb[2].mxu1 %v231_v62 }
 0x103   :  { %689 = vmatprep.mubr.msk.f32.mxu1 %vm867_vm0, %v868_v1 }
 0x104   :  { %v232_v3 = vmax.f32 %v189_v0, 0.0 }
 0x105   :  { %v193_v4 = vpop.f32.mrb[12].mxu0 }
 0x106   :  { %v194_v5 = vadd.f32 %v1065_v42, %v193_v4  ;;  %v623_v6 = vpop.f32.mrb[13].mxu0  ;;  %690 = vmatmul.mubr.f32.gmra.mrb[4].mxu1 %v232_v3 }
 0x107   :  { %692 = vmatprep.mubr.msk.f32.mxu1 %vm867_vm0, %v868_v1 }
 0x108   :  { %v233_v7 = vmax.f32 %v194_v5, 0.0 }
 0x109   :  { %v198_v8 = vpop.f32.mrb[14].mxu0 }
 0x10a   :  { %v199_v9 = vadd.f32 %v1065_v42, %v198_v8  ;;  %v626_v10 = vpop.f32.mrb[15].mxu0  ;;  %693 = vmatmul.mubr.f32.gmra.mrb[6].mxu1 %v233_v7 }
 0x10b   :  { %695 = vmatprep.mubr.msk.f32.mxu1 %vm867_vm0, %v868_v1 }
 0x10c   :  { %v234_v11 = vmax.f32 %v199_v9, 0.0 }
 0x10d   :  { %v203_v12 = vpop.f32.mrb[16].mxu0 }
 0x10e   :  { %v204_v13 = vadd.f32 %v1065_v42, %v203_v12  ;;  %v629_v14 = vpop.f32.mrb[17].mxu0  ;;  %696 = vmatmul.mubr.f32.gmra.mrb[8].mxu1 %v234_v11 }
 0x10f   :  { %698 = vmatprep.mubr.msk.f32.mxu1 %vm867_vm0, %v868_v1 }
 0x110   :  { %v235_v15 = vmax.f32 %v204_v13, 0.0 }
 0x111   :  { %v208_v16 = vpop.f32.mrb[18].mxu0 }
 0x112   :  { %v209_v17 = vadd.f32 %v1065_v42, %v208_v16  ;;  %v632_v18 = vpop.f32.mrb[19].mxu0  ;;  %699 = vmatmul.mubr.f32.gmra.mrb[10].mxu1 %v235_v15 }
 0x113   :  { %701 = vmatprep.mubr.msk.f32.mxu1 %vm867_vm0, %v868_v1 }
 0x114   :  { %v236_v19 = vmax.f32 %v209_v17, 0.0 }
 0x115   :  { %v213_v20 = vpop.f32.mrb[20].mxu0 }
 0x116   :  { %v214_v21 = vadd.f32 %v1065_v42, %v213_v20  ;;  %v635_v22 = vpop.f32.mrb[21].mxu0  ;;  %702 = vmatmul.mubr.f32.gmra.mrb[12].mxu1 %v236_v19 }
 0x117   :  { %704 = vmatprep.mubr.msk.f32.mxu1 %vm867_vm0, %v868_v1 }
 0x118   :  { %v237_v23 = vmax.f32 %v214_v21, 0.0 }
 0x119   :  { %v218_v24 = vpop.f32.mrb[22].mxu0 }
 0x11a   :  { %v219_v25 = vadd.f32 %v1065_v42, %v218_v24  ;;  %v638_v26 = vpop.f32.mrb[23].mxu0  ;;  %705 = vmatmul.mubr.f32.gmra.mrb[14].mxu1 %v237_v23 }
 0x11b   :  { %707 = vmatprep.mubr.msk.f32.mxu1 %vm867_vm0, %v868_v1 }
 0x11c   :  { %v238_v27 = vmax.f32 %v219_v25, 0.0 }
 0x11d   :  { %v223_v28 = vpop.f32.mrb[24].mxu0 }
 0x11e   :  { %v224_v29 = vadd.f32 %v1065_v42, %v223_v28  ;;  %v641_v30 = vpop.f32.mrb[25].mxu0  ;;  %708 = vmatmul.mubr.f32.gmra.mrb[16].mxu1 %v238_v27 }
 0x11f   :  { %710 = vmatprep.mubr.msk.f32.mxu1 %vm867_vm0, %v868_v1 }
 0x120   :  { %v239_v31 = vmax.f32 %v224_v29, 0.0 }
 0x122   :  { %711 = vmatmul.mubr.f32.gmra.mrb[18].mxu1 %v239_v31 }
 0x1c5   :  { %v329_v33 = vpop.f32.mrb[26].mxu0 }
 0x1c6   :  { %v330_v34 = vadd.f32 %v554_v32, %v329_v33  ;;  %v676_v35 = vpop.f32.mrb[27].mxu0 }
 0x1c8   :  { %393 = vmax.xlane.f32.xlu0 %v330_v34 }
 0x1c9   :  { %v334_v36 = vpop.f32.mrb[28].mxu0 }
 0x1ca   :  { %v335_v37 = vadd.f32 %v554_v32, %v334_v36  ;;  %v679_v38 = vpop.f32.mrb[29].mxu0 }
 0x1cc   :  { %395 = vmax.xlane.f32.xlu0 %v335_v37 }
 0x1cd   :  { %v339_v39 = vpop.f32.mrb[30].mxu0 }
 0x1ce   :  { %v340_v40 = vadd.f32 %v554_v32, %v339_v39  ;;  %v682_v41 = vpop.f32.mrb[31].mxu0 }
 0x1d0   :  { %397 = vmax.xlane.f32.xlu1 %v340_v40 }
 0x1d1   :  { %v344_v42 = vpop.f32.mrb[0].mxu1 }
 0x1d2   :  { %v345_v1 = vadd.f32 %v554_v32, %v344_v42  ;;  %v685_v43 = vpop.f32.mrb[1].mxu1 }
 0x1d4   :  { %399 = vmax.xlane.f32.xlu1 %v345_v1 }
 0x1d5   :  { %v349_v44 = vpop.f32.mrb[2].mxu1 }
 0x1d6   :  { %v350_v45 = vadd.f32 %v554_v32, %v349_v44  ;;  %v688_v46 = vpop.f32.mrb[3].mxu1 }
 0x1d8   :  { %401 = vmax.xlane.f32.xlu0 %v350_v45 }
 0x1d9   :  { %v354_v47 = vpop.f32.mrb[4].mxu1 }
 0x1da   :  { %v355_v48 = vadd.f32 %v554_v32, %v354_v47  ;;  %v691_v49 = vpop.f32.mrb[5].mxu1 }
 0x1dc   :  { %403 = vmax.xlane.f32.xlu1 %v355_v48 }
 0x1dd   :  { %v359_v50 = vpop.f32.mrb[6].mxu1 }
 0x1de   :  { %v360_v51 = vadd.f32 %v554_v32, %v359_v50  ;;  %v694_v52 = vpop.f32.mrb[7].mxu1 }
 0x1e0   :  { %405 = vmax.xlane.f32.xlu0 %v360_v51 }
 0x1e1   :  { %v364_v53 = vpop.f32.mrb[8].mxu1 }
 0x1e2   :  { %v365_v54 = vadd.f32 %v554_v32, %v364_v53  ;;  %v697_v55 = vpop.f32.mrb[9].mxu1 }
 0x1e4   :  { %407 = vmax.xlane.f32.xlu1 %v365_v54 }
 0x1e5   :  { %v369_v56 = vpop.f32.mrb[10].mxu1 }
 0x1e6   :  { %v1105_v57 = vadd.f32 %v554_v32, %v369_v56  ;;  %v700_v58 = vpop.f32.mrb[11].mxu1 }
 0x1e8   :  { %409 = vmax.xlane.f32.xlu0 %v1105_v57 }
 0x1e9   :  { %v374_v59 = vpop.f32.mrb[12].mxu1 }
 0x1ea   :  { %v1108_v60 = vadd.f32 %v554_v32, %v374_v59  ;;  %v703_v61 = vpop.f32.mrb[13].mxu1 }
 0x1ec   :  { %411 = vmax.xlane.f32.xlu1 %v1108_v60 }
 0x1ed   :  { %v379_v62 = vpop.f32.mrb[14].mxu1 }
 0x1ee   :  { %v1111_v63 = vadd.f32 %v554_v32, %v379_v62  ;;  %v706_v0 = vpop.f32.mrb[15].mxu1 }
 0x1f0   :  { %413 = vmax.xlane.f32.xlu0 %v1111_v63 }
 0x1f1   :  { %v384_v2 = vpop.f32.mrb[16].mxu1 }
 0x1f2   :  { %v1114_v3 = vadd.f32 %v554_v32, %v384_v2  ;;  %v709_v4 = vpop.f32.mrb[17].mxu1 }
 0x1f4   :  { %415 = vmax.xlane.f32.xlu1 %v1114_v3 }
 0x1f5   :  { %v389_v5 = vpop.f32.mrb[18].mxu1 }
 0x1f6   :  { %v1117_v6 = vadd.f32 %v554_v32, %v389_v5  ;;  %v712_v7 = vpop.f32.mrb[19].mxu1 }
 0x1f8   :  { %417 = vmax.xlane.f32.xlu0 %v1117_v6 }
 0x255   :  { %v394_v8 = vpop.xlane.xlu0 %393 }
 0x256   :  { %v419_v9 = vsub.f32 %v330_v34, %v394_v8 }
 0x258   :  { %v432_v10 = vmul.f32 1.442695, %v419_v9 }
 0x259   :  { %v396_v11 = vpop.xlane.xlu0 %395 }
 0x25a   :  { %763 = vpow2.f32 %v432_v10  ;;  %v420_v12 = vsub.f32 %v335_v37, %v396_v11 }
 0x25c   :  { %v434_v13 = vmul.f32 1.442695, %v420_v12 }
 0x25d   :  { %v398_v14 = vpop.xlane.xlu1 %397 }
 0x25e   :  { %765 = vpow2.f32 %v434_v13  ;;  %v421_v15 = vsub.f32 %v340_v40, %v398_v14 }
 0x260   :  { %v436_v16 = vmul.f32 1.442695, %v421_v15 }
 0x261   :  { %v400_v17 = vpop.xlane.xlu1 %399 }
 0x262   :  { %767 = vpow2.f32 %v436_v16  ;;  %v422_v18 = vsub.f32 %v345_v1, %v400_v17 }
 0x264   :  { %v1120_v19 = vpop.eup %763  ;;  %v438_v20 = vmul.f32 1.442695, %v422_v18 }
 0x265   :  { %v402_v21 = vpop.xlane.xlu0 %401  ;;  %458 = vadd.xlane.f32.xlu1 %v1120_v19 }
 0x266   :  { %769 = vpow2.f32 %v438_v20  ;;  %v423_v22 = vsub.f32 %v350_v45, %v402_v21 }
 0x268   :  { %v1123_v23 = vpop.eup %765  ;;  %v440_v24 = vmul.f32 1.442695, %v423_v22 }
 0x269   :  { %460 = vadd.xlane.f32.xlu0 %v1123_v23  ;;  %v404_v25 = vpop.xlane.xlu1 %403 }
 0x26a   :  { %771 = vpow2.f32 %v440_v24  ;;  %v424_v26 = vsub.f32 %v355_v48, %v404_v25 }
 0x26c   :  { %v1126_v27 = vpop.eup %767  ;;  %v442_v28 = vmul.f32 1.442695, %v424_v26 }
 0x26d   :  { %v406_v29 = vpop.xlane.xlu0 %405  ;;  %462 = vadd.xlane.f32.xlu1 %v1126_v27 }
 0x26e   :  { %773 = vpow2.f32 %v442_v28  ;;  %v425_v30 = vsub.f32 %v360_v51, %v406_v29 }
 0x270   :  { %v1129_v31 = vpop.eup %769  ;;  %v444_v32 = vmul.f32 1.442695, %v425_v30 }
 0x271   :  { %464 = vadd.xlane.f32.xlu0 %v1129_v31  ;;  %v408_v33 = vpop.xlane.xlu1 %407 }
 0x272   :  { %775 = vpow2.f32 %v444_v32  ;;  %v426_v34 = vsub.f32 %v365_v54, %v408_v33 }
 0x274   :  { %v1132_v35 = vpop.eup %771  ;;  %v446_v36 = vmul.f32 1.442695, %v426_v34 }
 0x275   :  { %v410_v37 = vpop.xlane.xlu0 %409  ;;  %466 = vadd.xlane.f32.xlu1 %v1132_v35 }
 0x276   :  { %777 = vpow2.f32 %v446_v36  ;;  %v427_v38 = vsub.f32 %v1105_v57, %v410_v37 }
 0x278   :  { %v1136_v39 = vpop.eup %773  ;;  %v448_v40 = vmul.f32 1.442695, %v427_v38 }
 0x279   :  { %468 = vadd.xlane.f32.xlu0 %v1136_v39  ;;  %v412_v41 = vpop.xlane.xlu1 %411 }
 0x27a   :  { %779 = vpow2.f32 %v448_v40  ;;  %v428_v42 = vsub.f32 %v1108_v60, %v412_v41 }
 0x27c   :  { %v1140_v1 = vpop.eup %775  ;;  %v450_v43 = vmul.f32 1.442695, %v428_v42 }
 0x27d   :  { %v414_v44 = vpop.xlane.xlu0 %413  ;;  %470 = vadd.xlane.f32.xlu1 %v1140_v1 }
 0x27e   :  { %781 = vpow2.f32 %v450_v43  ;;  %v429_v45 = vsub.f32 %v1111_v63, %v414_v44 }
 0x280   :  { %v1144_v46 = vpop.eup %777  ;;  %v452_v47 = vmul.f32 1.442695, %v429_v45 }
 0x281   :  { %472 = vadd.xlane.f32.xlu0 %v1144_v46  ;;  %v416_v48 = vpop.xlane.xlu1 %415 }
 0x282   :  { %783 = vpow2.f32 %v452_v47  ;;  %v430_v49 = vsub.f32 %v1114_v3, %v416_v48 }
 0x284   :  { %v1148_v50 = vpop.eup %779  ;;  %v454_v51 = vmul.f32 1.442695, %v430_v49 }
 0x285   :  { %v418_v52 = vpop.xlane.xlu0 %417  ;;  %474 = vadd.xlane.f32.xlu1 %v1148_v50 }
 0x286   :  { %785 = vpow2.f32 %v454_v51  ;;  %v431_v53 = vsub.f32 %v1117_v6, %v418_v52 }
 0x288   :  { %v782_v54 = vpop.eup %781  ;;  %v456_v55 = vmul.f32 1.442695, %v431_v53 }
 0x289   :  { %476 = vadd.xlane.f32.xlu0 %v782_v54 }
 0x28a   :  { %787 = vpow2.f32 %v456_v55 }
 0x28c   :  { %v1152_v56 = vpop.eup %783 }
 0x28d   :  { %478 = vadd.xlane.f32.xlu1 %v1152_v56 }
 0x290   :  { %v1155_v57 = vpop.eup %785 }
 0x291   :  { %480 = vadd.xlane.f32.xlu0 %v1155_v57 }
 0x294   :  { %v1158_v58 = vpop.eup %787 }
 0x295   :  { %482 = vadd.xlane.f32.xlu1 %v1158_v58 }
 0x2f2   :  { %v459_v59 = vpop.xlane.xlu1 %458 }
 0x2f3   :  { %789 = vrcp.f32 %v459_v59 }
 0x2f6   :  { %v461_v60 = vpop.xlane.xlu0 %460 }
 0x2f7   :  { %791 = vrcp.f32 %v461_v60 }
 0x2fa   :  { %v463_v61 = vpop.xlane.xlu1 %462 }
 0x2fb   :  { %793 = vrcp.f32 %v463_v61 }
 0x2fd   :  { %v790_v62 = vpop.eup %789 }
 0x2fe   :  { %v485_v63 = vmul.f32 %v790_v62, %v1120_v19  ;;  %v465_v0 = vpop.xlane.xlu0 %464 }
 0x2ff   :  { %795 = vrcp.f32 %v465_v0 }
 0x300   :  { %510 = vst [vmem:[#allocation5] sm:$0xff] %v485_v63 }
 0x301   :  { %v792_v2 = vpop.eup %791 }
 0x302   :  { %v487_v3 = vmul.f32 %v792_v2, %v1123_v23  ;;  %v467_v4 = vpop.xlane.xlu1 %466 }
 0x303   :  { %797 = vrcp.f32 %v467_v4 }
 0x304   :  { %511 = vst [vmem:[#allocation5 + $0x8] sm:$0xff] %v487_v3 }
 0x305   :  { %v794_v5 = vpop.eup %793 }
 0x306   :  { %v489_v6 = vmul.f32 %v794_v5, %v1126_v27  ;;  %v469_v7 = vpop.xlane.xlu0 %468 }
 0x307   :  { %799 = vrcp.f32 %v469_v7 }
 0x308   :  { %512 = vst [vmem:[#allocation5 + $0x10] sm:$0xff] %v489_v6 }
 0x309   :  { %v796_v8 = vpop.eup %795 }
 0x30a   :  { %v491_v9 = vmul.f32 %v796_v8, %v1129_v31  ;;  %v471_v10 = vpop.xlane.xlu1 %470 }
 0x30b   :  { %801 = vrcp.f32 %v471_v10 }
 0x30c   :  { %513 = vst [vmem:[#allocation5 + $0x18] sm:$0xff] %v491_v9 }
 0x30d   :  { %v798_v11 = vpop.eup %797 }
 0x30e   :  { %v493_v12 = vmul.f32 %v798_v11, %v1132_v35  ;;  %v473_v13 = vpop.xlane.xlu0 %472 }
 0x30f   :  { %803 = vrcp.f32 %v473_v13 }
 0x310   :  { %514 = vst [vmem:[#allocation5 + $0x20] sm:$0xff] %v493_v12 }
 0x311   :  { %v800_v14 = vpop.eup %799 }
 0x312   :  { %v495_v15 = vmul.f32 %v800_v14, %v1136_v39  ;;  %v475_v16 = vpop.xlane.xlu1 %474 }
 0x313   :  { %805 = vrcp.f32 %v475_v16 }
 0x314   :  { %515 = vst [vmem:[#allocation5 + $0x28] sm:$0xff] %v495_v15 }
 0x315   :  { %v802_v17 = vpop.eup %801 }
 0x316   :  { %v497_v18 = vmul.f32 %v802_v17, %v1140_v1  ;;  %v477_v19 = vpop.xlane.xlu0 %476 }
 0x317   :  { %807 = vrcp.f32 %v477_v19 }
 0x318   :  { %516 = vst [vmem:[#allocation5 + $0x30] sm:$0xff] %v497_v18 }
 0x319   :  { %v804_v20 = vpop.eup %803 }
 0x31a   :  { %v499_v21 = vmul.f32 %v804_v20, %v1144_v46  ;;  %v479_v22 = vpop.xlane.xlu1 %478 }
 0x31b   :  { %809 = vrcp.f32 %v479_v22 }
 0x31c   :  { %517 = vst [vmem:[#allocation5 + $0x38] sm:$0xff] %v499_v21 }
 0x31d   :  { %v806_v23 = vpop.eup %805 }
 0x31e   :  { %v501_v24 = vmul.f32 %v806_v23, %v1148_v50  ;;  %v481_v25 = vpop.xlane.xlu0 %480 }
 0x31f   :  { %811 = vrcp.f32 %v481_v25 }
 0x320   :  { %518 = vst [vmem:[#allocation5 + $0x40] sm:$0xff] %v501_v24 }
 0x321   :  { %v808_v26 = vpop.eup %807 }
 0x322   :  { %v503_v27 = vmul.f32 %v808_v26, %v782_v54  ;;  %v483_v28 = vpop.xlane.xlu1 %482 }
 0x323   :  { %813 = vrcp.f32 %v483_v28 }
 0x324   :  { %519 = vst [vmem:[#allocation5 + $0x48] sm:$0xff] %v503_v27 }
 0x325   :  { %v810_v29 = vpop.eup %809 }
 0x326   :  { %v505_v30 = vmul.f32 %v810_v29, %v1152_v56 }
 0x328   :  { %520 = vst [vmem:[#allocation5 + $0x50] sm:$0xff] %v505_v30 }
 0x329   :  { %v812_v31 = vpop.eup %811 }
 0x32a   :  { %v507_v32 = vmul.f32 %v812_v31, %v1155_v57 }
 0x32c   :  { %521 = vst [vmem:[#allocation5 + $0x58] sm:$0xff] %v507_v32 }
 0x32d   :  { %v814_v33 = vpop.eup %813 }
 0x32e   :  { %v509_v34 = vmul.f32 %v814_v33, %v1158_v58 }
 0x330   :  { %522 = vst [vmem:[#allocation5 + $0x60] sm:$0xff] %v509_v34 }
 0x331   :  { %848 = shalt.err (!%p845_p12)
}
 0x332   :  { %s849_s21 = scalar_lea.hbm %s1193_s5, 1664 }
 0x333   :  { %p850_p13 = scmp.ne.s32.totalorder %s1193_s5, %s849_s21  ;;  %p853_p0 = scmp.lt.u32.totalorder %s849_s21, %s1193_s5 }
 0x335   :  { %p855_p1 = pnand %p853_p0, %p850_p13 }
 0x337   :  { %858 = shalt.err (!%p855_p1)
}
 0x338   :  { %534 = dma.vmem_to_hbm [thread:$0]  %s529_s4, 1664, %s1193_s5, [#allocation4], %s864_s28, %s864_s28, %s865_s29  }
 0x339   :  { %861 = dma.done.wait [#allocation4], 1664  }
 0x33a   :  { %862 = vsyncadd [#allocation4], 4294965632 }
 0x33b   :  { %538 = vsyncpa [#allocation3], 1 }
 0x33c   :  { %539 = vsyncpa [#allocation4], 1 }

</bundles_post_ra>
